<compile_context>
chip_gen: v5e
topology: v5e:2x2
jax: 0.10.0
libtpu: 0.0.40
codegen_flags: <defaults>
</compile_context>

<pallas_src>
import numpy as np
import jax
import jax.numpy as jnp
from jax.experimental import pallas as pl
from jax.experimental.pallas import tpu as pltpu


_LANE = 128
_MAX_ROWS_PER_TILE = 1024  # grid-step overhead is already amortized by ~512-1024 rows


def _vmem_capacity_bytes():
    """Physical VMEM per core; fall back to the smallest current-gen size (v7x: 64 MiB)."""
    try:
        return int(pltpu.get_tpu_info().vmem_capacity_bytes)
    except Exception:
        return 64 * 1024 * 1024


def _sublane_multiple(itemsize):
    # f32 packs 8 rows / vreg, bf16 16, int8/fp8 32.
    return max(8, 32 // max(int(itemsize), 1))


def _make_cat_kernel_sublane(sizes):
    """Inputs (TM, size_i, inner) -> output (TM, total, inner); concat on sublane axis."""
    def kernel(*refs):
        out_ref = refs[-1]
        off = 0
        for i, s in enumerate(sizes):
            out_ref[:, off:off + s, :] = refs[i][...]
            off += s
    return kernel


def _make_cat_kernel_lane(widths):
    """Inputs (TM, w_i) -> output (TM, total_width); concat on lane axis."""
    def kernel(*refs):
        out_ref = refs[-1]
        off = 0
        for i, w in enumerate(widths):
            out_ref[:, off:off + w] = refs[i][...]
            off += w
    return kernel


def pallas_cat(xs, dim=0):
    """Concatenate a list/tuple of arrays along `dim` using a Pallas TPU kernel."""
    xs = list(xs)
    assert len(xs) >= 1, "cat requires a non-empty sequence"
    ndim = xs[0].ndim
    assert ndim >= 1
    dim = dim % ndim

    # torch.cat promotes dtypes across inputs; mirror that.
    dtype = jnp.result_type(*[x.dtype for x in xs])
    xs = [x.astype(dtype) for x in xs]

    ref_shape = xs[0].shape
    for x in xs:
        assert x.ndim == ndim
        for ax in range(ndim):
            if ax != dim:
                assert x.shape[ax] == ref_shape[ax], "non-cat dims must match"

    cat_sizes_all = [int(x.shape[dim]) for x in xs]
    total_cat = sum(cat_sizes_all)
    out_shape = list(ref_shape)
    out_shape[dim] = total_cat
    out_shape = tuple(out_shape)

    # Drop zero-sized inputs (they contribute nothing).
    kept = [(x, s) for x, s in zip(xs, cat_sizes_all) if s > 0]
    if not kept:
        return jnp.zeros(out_shape, dtype)
    xs = [x for x, _ in kept]
    cat_sizes = [s for _, s in kept]

    outer = int(np.prod(ref_shape[:dim], dtype=np.int64)) if dim > 0 else 1
    inner = int(np.prod(ref_shape[dim + 1:], dtype=np.int64)) if dim + 1 < ndim else 1

    itemsize = jnp.dtype(dtype).itemsize
    total_width = total_cat * inner                     # output elements per outer row
    total_in_bytes = outer * total_width * itemsize

    # --- VMEM sizing: double-buffered input tiles + output tile must fit. ---
    cap = _vmem_capacity_bytes()
    vmem_limit = min(int(cap * 0.85), 112 * 1024 * 1024)
    budget = vmem_limit // 2                            # headroom for pipeline bookkeeping
    row_bytes = 4 * total_width * itemsize              # 2 buffers * (inputs + output)
    tm_cap = max(1, budget // max(row_bytes, 1))

    cost = pl.CostEstimate(flops=0, transcendentals=0,
                           bytes_accessed=2 * total_in_bytes)
    cparams = pltpu.CompilerParams(
        dimension_semantics=("parallel",),
        vmem_limit_bytes=int(vmem_limit),
    )

    use_sublane = inner >= _LANE  # lane-dense path: concat along sublane axis

    if use_sublane:
        tm = max(1, min(tm_cap, _MAX_ROWS_PER_TILE, outer))
        grid = (pl.cdiv(outer, tm),)
        xs_v = [x.reshape(outer, s, inner) for x, s in zip(xs, cat_sizes)]
        in_specs = [
            pl.BlockSpec((tm, s, inner), lambda r: (r, 0, 0)) for s in cat_sizes
        ]
        out_spec = pl.BlockSpec((tm, total_cat, inner), lambda r: (r, 0, 0))
        out2 = pl.pallas_call(
            _make_cat_kernel_sublane(cat_sizes),
            out_shape=jax.ShapeDtypeStruct((outer, total_cat, inner), dtype),
            grid=grid,
            in_specs=in_specs,
            out_specs=out_spec,
            compiler_params=cparams,
            cost_estimate=cost,
        )(*xs_v)
        return out2.reshape(out_shape)

    # Small `inner` (e.g. concat along the last axis): 2-D lane-slice formulation.
    widths = [s * inner for s in cat_sizes]
    sub = _sublane_multiple(itemsize)
    if outer <= sub:
        tm = outer                                  # block equals full dim -> allowed
    else:
        tm = min(tm_cap, _MAX_ROWS_PER_TILE, outer)
        tm = max(sub, (tm // sub) * sub)            # keep sublane-packing multiple
    grid = (pl.cdiv(outer, tm),)
    xs_v = [x.reshape(outer, w) for x, w in zip(xs, widths)]
    in_specs = [pl.BlockSpec((tm, w), lambda r: (r, 0)) for w in widths]
    out_spec = pl.BlockSpec((tm, total_width), lambda r: (r, 0))
    out2 = pl.pallas_call(
        _make_cat_kernel_lane(widths),
        out_shape=jax.ShapeDtypeStruct((outer, total_width), dtype),
        grid=grid,
        in_specs=in_specs,
        out_specs=out_spec,
        compiler_params=cparams,
        cost_estimate=cost,
    )(*xs_v)
    return out2.reshape(out_shape)


class Cat:
    """JAX/Pallas equivalent of the PyTorch Cat module."""

    def __init__(self, dim=0):
        self.dim = dim

    def __call__(self, x):
        return pallas_cat(x, dim=self.dim)


if __name__ == "__main__":
    key = jax.random.PRNGKey(0)
    k1, k2, k3 = jax.random.split(key, 3)

    # 1) dim=0 concat (module default), NCHW-style tensors.
    x1 = jax.random.normal(k1, (2, 4, 16, 16), dtype=jnp.float32)
    x2 = jax.random.normal(k2, (3, 4, 16, 16), dtype=jnp.float32)
    x3 = jax.random.normal(k3, (1, 4, 16, 16), dtype=jnp.float32)
    xs = [x1, x2, x3]
    out = jax.block_until_ready(Cat(dim=0)(xs))
    ref = jnp.concatenate(xs, axis=0)
    assert out.shape == ref.shape
    np.testing.assert_allclose(np.asarray(out), np.asarray(ref), rtol=0, atol=0)

    # 2) dim=1 (channel) concat, like torch.cat(x, dim=1) in ConvNeXt-style blocks.
    y1 = jax.random.normal(k1, (2, 4, 16, 16), dtype=jnp.float32)
    y2 = jax.random.normal(k2, (2, 6, 16, 16), dtype=jnp.float32)
    out2 = jax.block_until_ready(Cat(dim=1)([y1, y2]))
    ref2 = jnp.concatenate([y1, y2], axis=1)
    np.testing.assert_allclose(np.asarray(out2), np.asarray(ref2), rtol=0, atol=0)

    # 3) last-axis concat exercises the 2-D lane-slice path.
    z1 = jax.random.normal(k1, (2, 4, 8, 128), dtype=jnp.float32)
    z2 = jax.random.normal(k2, (2, 4, 8, 128), dtype=jnp.float32)
    out3 = jax.block_until_ready(Cat(dim=-1)([z1, z2]))
    ref3 = jnp.concatenate([z1, z2], axis=-1)
    np.testing.assert_allclose(np.asarray(out3), np.asarray(ref3), rtol=0, atol=0)

    print("KERNEL_OK")
</pallas_src>

<mosaic_0001>
module attributes {stable_mosaic.version = 11 : i64} {
  func.func @kernel(%arg0: i32, %arg1: memref<1x2x1024xf32, #tpu.memory_space<vmem>>, %arg2: memref<1x3x1024xf32, #tpu.memory_space<vmem>>, %arg3: memref<1x1x1024xf32, #tpu.memory_space<vmem>>, %arg4: memref<1x6x1024xf32, #tpu.memory_space<vmem>>) attributes {dimension_semantics = [#tpu.dimension_semantics<parallel>], iteration_bounds = array<i64: 1>, scalar_prefetch = 0 : i64, scratch_operands = 0 : i64, tpu.core_type = #tpu.core_type<tc>, window_params = [{transform_indices = @transform_0, window_bounds = array<i64: 1, 2, 1024>}, {transform_indices = @transform_1, window_bounds = array<i64: 1, 3, 1024>}, {transform_indices = @transform_2, window_bounds = array<i64: 1, 1, 1024>}, {transform_indices = @transform_3, window_bounds = array<i64: 1, 6, 1024>}]} {
    %c0 = arith.constant 0 : index
    %c0_0 = arith.constant 0 : index
    %c0_1 = arith.constant 0 : index
    %0 = vector.load %arg1[%c0, %c0_0, %c0_1] : memref<1x2x1024xf32, #tpu.memory_space<vmem>>, vector<1x2x1024xf32>
    %c0_2 = arith.constant 0 : index
    %c0_3 = arith.constant 0 : index
    %c0_4 = arith.constant 0 : index
    %1 = vector.load %arg4[%c0_2, %c0_3, %c0_4] : memref<1x6x1024xf32, #tpu.memory_space<vmem>>, vector<1x2x1024xf32>
    tpu.vector_store %arg4[%c0_2, %c0_3, %c0_4], %0 {strides = array<i32>} : memref<1x6x1024xf32, #tpu.memory_space<vmem>>, vector<1x2x1024xf32>,
    %c0_5 = arith.constant 0 : index
    %c0_6 = arith.constant 0 : index
    %c0_7 = arith.constant 0 : index
    %2 = vector.load %arg2[%c0_5, %c0_6, %c0_7] : memref<1x3x1024xf32, #tpu.memory_space<vmem>>, vector<1x3x1024xf32>
    %c0_8 = arith.constant 0 : index
    %c2 = arith.constant 2 : index
    %c0_9 = arith.constant 0 : index
    %3 = vector.load %arg4[%c0_8, %c2, %c0_9] : memref<1x6x1024xf32, #tpu.memory_space<vmem>>, vector<1x3x1024xf32>
    tpu.vector_store %arg4[%c0_8, %c2, %c0_9], %2 {strides = array<i32>} : memref<1x6x1024xf32, #tpu.memory_space<vmem>>, vector<1x3x1024xf32>,
    %c0_10 = arith.constant 0 : index
    %c0_11 = arith.constant 0 : index
    %c0_12 = arith.constant 0 : index
    %4 = vector.load %arg3[%c0_10, %c0_11, %c0_12] : memref<1x1x1024xf32, #tpu.memory_space<vmem>>, vector<1x1x1024xf32>
    %c0_13 = arith.constant 0 : index
    %c5 = arith.constant 5 : index
    %c0_14 = arith.constant 0 : index
    %5 = vector.load %arg4[%c0_13, %c5, %c0_14] : memref<1x6x1024xf32, #tpu.memory_space<vmem>>, vector<1x1x1024xf32>
    tpu.vector_store %arg4[%c0_13, %c5, %c0_14], %4 {strides = array<i32>} : memref<1x6x1024xf32, #tpu.memory_space<vmem>>, vector<1x1x1024xf32>,
    return
  }
  func.func @transform_0(%arg0: i32) -> (i32, i32, i32) {
    %c0_i32 = arith.constant 0 : i32
    %c0_i32_0 = arith.constant 0 : i32
    %c0_i32_1 = arith.constant 0 : i32
    return %arg0, %c0_i32, %c0_i32_0 : i32, i32, i32
  }
  func.func @transform_1(%arg0: i32) -> (i32, i32, i32) {
    %c0_i32 = arith.constant 0 : i32
    %c0_i32_0 = arith.constant 0 : i32
    %c0_i32_1 = arith.constant 0 : i32
    return %arg0, %c0_i32, %c0_i32_0 : i32, i32, i32
  }
  func.func @transform_2(%arg0: i32) -> (i32, i32, i32) {
    %c0_i32 = arith.constant 0 : i32
    %c0_i32_0 = arith.constant 0 : i32
    %c0_i32_1 = arith.constant 0 : i32
    return %arg0, %c0_i32, %c0_i32_0 : i32, i32, i32
  }
  func.func @transform_3(%arg0: i32) -> (i32, i32, i32) {
    %c0_i32 = arith.constant 0 : i32
    %c0_i32_0 = arith.constant 0 : i32
    %c0_i32_1 = arith.constant 0 : i32
    return %arg0, %c0_i32, %c0_i32_0 : i32, i32, i32
  }
}

</mosaic_0001>

<bundles_post_ra>
// kernel: tpu_custom_call.1
= control target key start
LH: loop header
LB: loop body
LE: loop exit
PB: predicated region body
PF: predicated region fallthrough
CT: control target
= control target key end

     0   :  { %s197_s0 = inlined_call_operand.vmem [shape: f32[1,2,1024], index: 0, kind: input, shape index: {}]   ;;  %s198_s2 = inlined_call_operand.vmem [shape: f32[1,1,1024], index: 2, kind: input, shape index: {}]   ;;  %s199_s3 = inlined_call_operand.vmem [shape: f32[1,6,1024], index: 3, kind: output, shape index: {}]   ;;  %s200_s1 = inlined_call_operand.vmem [shape: f32[1,3,1024], index: 1, kind: input, shape index: {}]  }
   0x1   :  { %v14_v0 = vld [vmem:[%s197_s0] sm:$0xff]  ;;  %v15_v1 = vld [vmem:[%s197_s0 + $0x8] sm:$0xff]  ;;  %v47_v13 = vld [vmem:[%s200_s1 + $0x10] sm:$0x77] }
   0x2   :  { %18 = vst [vmem:[#allocation1] ss:$4 sm:$0xff] %v14_v0  ;;  %v92_v2 = vld [vmem:[%s198_s2] sm:$0xff]  ;;  %v46_v12 = vld [vmem:[%s200_s1 + $0x8] sm:$0x77] }
   0x3   :  { %20 = vst [vmem:[#allocation1 + $0x20] ss:$4 sm:$0xff] %v15_v1  ;;  %v45_v9 = vld [vmem:[%s200_s1] sm:$0x77]  ;;  %v48_v14 = vld [vmem:[%s200_s1 + $0x18] sm:$0x77] }
   0x4   :  { %100 = vst [vmem:[%s199_s3 + $0x5] ss:$8 sm:$0xf] %v92_v2 }
   0x5   :  { %101 = vst [vmem:[%s199_s3 + $0x5] ss:$8 sm:$0xf0] %v92_v2 }
   0x9   :  { %v21_v3 = vld.sshfl [vmem:[#allocation1] sm:$0xff pattern:$0x73625140]  ;;  %v22_v4 = vld.sshfl [vmem:[#allocation1 + $0x8] sm:$0xff pattern:$0x73625140] }
   0xa   :  { %37 = vst [vmem:[%s199_s3] sm:$0x3] %v21_v3  ;;  %v23_v5 = vld.sshfl [vmem:[#allocation1 + $0x10] sm:$0xff pattern:$0x73625140] }
   0xb   :  { %38 = vst [vmem:[%s199_s3 + $0x8] sm:$0x3] %v22_v4  ;;  %v24_v6 = vld.sshfl [vmem:[#allocation1 + $0x18] sm:$0xff pattern:$0x73625140] }
   0xc   :  { %39 = vst [vmem:[%s199_s3 + $0x10] sm:$0x3] %v23_v5  ;;  %v25_v7 = vld.sshfl [vmem:[#allocation1 + $0x20] sm:$0xff pattern:$0x73625140] }
   0xd   :  { %40 = vst [vmem:[%s199_s3 + $0x18] sm:$0x3] %v24_v6  ;;  %v26_v8 = vld.sshfl [vmem:[#allocation1 + $0x28] sm:$0xff pattern:$0x73625140] }
   0xe   :  { %41 = vst [vmem:[%s199_s3 + $0x20] sm:$0x3] %v25_v7  ;;  %v27_v10 = vld.sshfl [vmem:[#allocation1 + $0x30] sm:$0xff pattern:$0x73625140] }
   0xf   :  { %42 = vst [vmem:[%s199_s3 + $0x28] sm:$0x3] %v26_v8  ;;  %v28_v11 = vld.sshfl [vmem:[#allocation1 + $0x38] sm:$0xff pattern:$0x73625140] }
  0x10   :  { %43 = vst [vmem:[%s199_s3 + $0x30] sm:$0x3] %v27_v10 }
  0x11   :  { %44 = vst [vmem:[%s199_s3 + $0x38] sm:$0x3] %v28_v11 }
  0x12   :  { %53 = vst [vmem:[#allocation1] ss:$2 sm:$0xff] %v45_v9 }
  0x13   :  { %55 = vst [vmem:[#allocation1 + $0x10] ss:$2 sm:$0xff] %v46_v12 }
  0x14   :  { %57 = vst [vmem:[#allocation1 + $0x20] ss:$2 sm:$0xff] %v47_v13 }
  0x15   :  { %59 = vst [vmem:[#allocation1 + $0x30] ss:$2 sm:$0xff] %v48_v14 }
  0x19   :  { %v60_v15 = vld.sshfl [vmem:[#allocation1] sm:$0xff pattern:$0x75316420]  ;;  %v61_v16 = vld.sshfl [vmem:[#allocation1 + $0x8] sm:$0xff pattern:$0x75316420] }
  0x1a   :  { %v68_v17 = vrot.slane %v60_v15, 6  ;;  %v69_v18 = vrot.slane %v61_v16, 6  ;;  %v62_v19 = vld.sshfl [vmem:[#allocation1 + $0x10] sm:$0xff pattern:$0x75316420] }
  0x1b   :  { %v70_v20 = vrot.slane %v62_v19, 6  ;;  %v63_v21 = vld.sshfl [vmem:[#allocation1 + $0x18] sm:$0xff pattern:$0x75316420] }
  0x1c   :  { %84 = vst [vmem:[%s199_s3] sm:$0x1c] %v68_v17  ;;  %v71_v22 = vrot.slane %v63_v21, 6  ;;  %v64_v23 = vld.sshfl [vmem:[#allocation1 + $0x20] sm:$0xff pattern:$0x75316420] }
  0x1d   :  { %85 = vst [vmem:[%s199_s3 + $0x8] sm:$0x1c] %v69_v18  ;;  %v72_v24 = vrot.slane %v64_v23, 6  ;;  %v65_v25 = vld.sshfl [vmem:[#allocation1 + $0x28] sm:$0xff pattern:$0x75316420] }
  0x1e   :  { %86 = vst [vmem:[%s199_s3 + $0x10] sm:$0x1c] %v70_v20  ;;  %v73_v26 = vrot.slane %v65_v25, 6  ;;  %v66_v27 = vld.sshfl [vmem:[#allocation1 + $0x30] sm:$0xff pattern:$0x75316420] }
  0x1f   :  { %87 = vst [vmem:[%s199_s3 + $0x18] sm:$0x1c] %v71_v22  ;;  %v74_v28 = vrot.slane %v66_v27, 6  ;;  %v67_v29 = vld.sshfl [vmem:[#allocation1 + $0x38] sm:$0xff pattern:$0x75316420] }
  0x20   :  { %88 = vst [vmem:[%s199_s3 + $0x20] sm:$0x1c] %v72_v24  ;;  %v75_v30 = vrot.slane %v67_v29, 6 }
  0x21   :  { %89 = vst [vmem:[%s199_s3 + $0x28] sm:$0x1c] %v73_v26 }
  0x22   :  { %90 = vst [vmem:[%s199_s3 + $0x30] sm:$0x1c] %v74_v28 }
  0x23   :  { %91 = vst [vmem:[%s199_s3 + $0x38] sm:$0x1c] %v75_v30 }

</bundles_post_ra>
